<compile_context>
chip_gen: v7x
topology: tpu7x:2x2x1
jax: 0.10.0
libtpu: 0.0.40
codegen_flags: <defaults>
</compile_context>

<pallas_src>
import jax
import jax.numpy as jnp
from jax import lax
from jax.experimental import pallas as pl
from jax.experimental.pallas import tpu as pltpu


def head_kernel(x_ref, w_ref, o_ref):
    # x_ref: (Bb, T, C) activations (bf16 by default)
    # w_ref: (C, 3H)   packed K|Q|V projection weight (same dtype as x)
    # o_ref: (Bb, T, H) output (f32)
    Bb, T, C = x_ref.shape
    H = w_ref.shape[1] // 3
    mxu = x_ref.dtype                      # dtype fed to the MXU (bf16 by default)

    # Fused QKV projection for the whole block: (Bb*T, C) @ (C, 3H) -> (Bb*T, 3H).
    # The (Bb,T,C)->(Bb*T,C) reshape only merges non-minor dims (T = 8 is a full
    # sublane tile), so it is a zero-cost retile; same for the inverse below.
    x2d = x_ref[...].reshape(Bb * T, C)
    kqv = jnp.dot(x2d, w_ref[...], preferred_element_type=jnp.float32)
    kqv = kqv.reshape(Bb, T, 3 * H)        # f32 accumulations

    scale = C ** -0.5
    k = kqv[:, :, 0:H]
    q = kqv[:, :, H:2 * H] * scale         # scale the (Bb,T,H) operand, not (Bb,T,T)
    v = kqv[:, :, 2 * H:3 * H]

    # Scores = k @ q^T (module semantics), contracted over H, batched over Bb.
    s = jnp.einsum("bth,bsh->bts", k.astype(mxu), q.astype(mxu),
                   preferred_element_type=jnp.float32)        # (Bb, T, T) f32

    # Causal mask (tril == 0 -> -inf).  -inf is safe: the diagonal is always
    # unmasked so no row is ever fully masked (no exp(-inf - (-inf)) NaN).
    row = lax.broadcasted_iota(jnp.int32, (Bb, T, T), 1)
    col = lax.broadcasted_iota(jnp.int32, (Bb, T, T), 2)
    s = jnp.where(col <= row, s, -jnp.inf)

    # Numerically-stable softmax; exact division (VALU slack -> keeps parity tight).
    m = jnp.max(s, axis=-1, keepdims=True)
    p = jnp.exp(s - m)
    wei = p / jnp.sum(p, axis=-1, keepdims=True)

    out = jnp.einsum("bts,bsh->bth", wei.astype(mxu), v.astype(mxu),
                     preferred_element_type=jnp.float32)      # (Bb, T, H)
    o_ref[...] = out.astype(o_ref.dtype)


def _default_batches_per_step(batch):
    """Collapse the batch grid on single-TC chips; keep 2 parallel steps on v7x."""
    try:
        kind = jax.devices()[0].device_kind.lower()
    except Exception:
        kind = ""
    if ("v7" in kind or "7x" in kind) and batch >= 2 and batch % 2 == 0:
        return batch // 2                  # one grid step per TensorCore
    return batch                           # v5e/v6e (or unknown): a single step


def head_forward(x, w_key, w_query, w_value, *,
                 mxu_dtype=jnp.bfloat16, batches_per_step=None):
    """x: (B, T, C); w_*: (H, C) nn.Linear weights (bias=False). Returns (B, T, H)."""
    B, T, C = x.shape
    H = w_key.shape[0]
    out_dtype = x.dtype

    if batches_per_step is None:
        batches_per_step = _default_batches_per_step(B)
    assert B % batches_per_step == 0
    n_steps = B // batches_per_step

    # Pack K|Q|V weights once, already transposed to (C, 3H): the in-kernel QKV
    # matmul is a canonical [M,K]x[K,N] MXU push with no layout fixups, and the
    # weight block stays VMEM-resident across the (tiny) grid.
    w_kqv = jnp.concatenate([w_key, w_query, w_value], axis=0).T.astype(mxu_dtype)
    x_in = x.astype(mxu_dtype)

    return pl.pallas_call(
        head_kernel,
        out_shape=jax.ShapeDtypeStruct((B, T, H), out_dtype),
        grid=(n_steps,),
        in_specs=[
            pl.BlockSpec((batches_per_step, T, C), lambda b: (b, 0, 0)),
            # Same block every grid step -> weight stays resident in VMEM.
            pl.BlockSpec((C, 3 * H), lambda b: (0, 0)),
        ],
        out_specs=pl.BlockSpec((batches_per_step, T, H), lambda b: (b, 0, 0)),
        compiler_params=pltpu.CompilerParams(
            dimension_semantics=("parallel",)),
    )(x_in, w_kqv)


def head_reference(x, w_key, w_query, w_value):
    """Pure-JAX f32 reference matching the PyTorch forward (eval mode)."""
    B, T, C = x.shape
    hi = lax.Precision.HIGHEST   # true f32 on TPU (default may use bf16 passes)
    k = jnp.einsum("btc,hc->bth", x, w_key, precision=hi)
    q = jnp.einsum("btc,hc->bth", x, w_query, precision=hi)
    v = jnp.einsum("btc,hc->bth", x, w_value, precision=hi)
    wei = jnp.einsum("bth,bsh->bts", k, q, precision=hi) * (C ** -0.5)
    tril = jnp.tril(jnp.ones((T, T), dtype=bool))
    wei = jnp.where(tril, wei, -jnp.inf)
    wei = jax.nn.softmax(wei, axis=-1)
    return jnp.einsum("bts,bsh->bth", wei, v, precision=hi)


if __name__ == "__main__":
    # module hyperparameters (small, consistent with the forward)
    emb_dim = 32        # C
    head_size = 16      # H
    block_length = 8    # T
    batch = 2           # B

    key = jax.random.PRNGKey(0)
    kx, kk, kq, kv = jax.random.split(key, 4)

    x = jax.random.normal(kx, (batch, block_length, emb_dim), dtype=jnp.float32)
    # deterministic nn.Linear-style weights, shape (head_size, emb_dim)
    w_key = jax.random.normal(kk, (head_size, emb_dim), dtype=jnp.float32) * (emb_dim ** -0.5)
    w_query = jax.random.normal(kq, (head_size, emb_dim), dtype=jnp.float32) * (emb_dim ** -0.5)
    w_value = jax.random.normal(kv, (head_size, emb_dim), dtype=jnp.float32) * (emb_dim ** -0.5)

    out = jax.block_until_ready(head_forward(x, w_key, w_query, w_value))
    ref = head_reference(x, w_key, w_query, w_value)

    assert out.shape == (batch, block_length, head_size)
    assert bool(jnp.isfinite(out).all())
    # Tolerance rationale: the kernel deliberately feeds the MXU bf16 operands
    # (f32 accumulation, per the v6e/v7x perf guidance); bf16 rounding of
    # x/w/k/q/v/wei bounds the end-to-end error at a few 1e-3 on these O(1)
    # outputs, so 2e-2 is a safe envelope that still catches any real
    # algorithmic mistake (those produce O(1) differences).
    assert jnp.allclose(out, ref, atol=2e-2, rtol=2e-2), "mismatch vs reference"

    print("KERNEL_OK")
</pallas_src>

<mosaic_0001>
module attributes {stable_mosaic.version = 11 : i64} {
  func.func @head_kernel(%arg0: i32, %arg1: memref<2x8x32xbf16, #tpu.memory_space<vmem>>, %arg2: memref<32x48xbf16, #tpu.memory_space<vmem>>, %arg3: memref<2x8x16xf32, #tpu.memory_space<vmem>>) attributes {dimension_semantics = [#tpu.dimension_semantics<parallel>], iteration_bounds = array<i64: 1>, scalar_prefetch = 0 : i64, scratch_operands = 0 : i64, tpu.core_type = #tpu.core_type<tc>, window_params = [{transform_indices = @transform_0, window_bounds = array<i64: 2, 8, 32>}, {pipeline_mode = #tpu.pipeline_mode<synchronous>, transform_indices = @transform_1, window_bounds = array<i64: 32, 48>}, {transform_indices = @transform_2, window_bounds = array<i64: 2, 8, 16>}]} {
    %c0 = arith.constant 0 : index
    %c0_0 = arith.constant 0 : index
    %c0_1 = arith.constant 0 : index
    %0 = vector.load %arg1[%c0, %c0_0, %c0_1] : memref<2x8x32xbf16, #tpu.memory_space<vmem>>, vector<2x8x32xbf16>
    %1 = vector.shape_cast %0 : vector<2x8x32xbf16> to vector<16x32xbf16>
    %c0_2 = arith.constant 0 : index
    %c0_3 = arith.constant 0 : index
    %2 = vector.load %arg2[%c0_2, %c0_3] : memref<32x48xbf16, #tpu.memory_space<vmem>>, vector<32x48xbf16>
    %cst = arith.constant dense<0.000000e+00> : vector<16x48xf32>
    %3 = tpu.matmul %1, %2, %cst {dimension_numbers = #tpu.dot_dimension_numbers<[1], [0], [0], [1], [0, 0, 1, 1], [], []>} : vector<16x32xbf16>, vector<32x48xbf16>, vector<16x48xf32> -> vector<16x48xf32>
    %4 = vector.shape_cast %3 : vector<16x48xf32> to vector<2x8x48xf32>
    %5 = vector.extract_strided_slice %4 {offsets = [0, 0, 0], sizes = [2, 8, 16], strides = [1, 1, 1]} : vector<2x8x48xf32> to vector<2x8x16xf32>
    %6 = vector.extract_strided_slice %4 {offsets = [0, 0, 16], sizes = [2, 8, 16], strides = [1, 1, 1]} : vector<2x8x48xf32> to vector<2x8x16xf32>
    %cst_4 = arith.constant 0.176776692 : f32
    %7 = vector.broadcast %cst_4 : f32 to vector<2x8x16xf32>
    %8 = arith.mulf %6, %7 : vector<2x8x16xf32>
    %9 = vector.extract_strided_slice %4 {offsets = [0, 0, 32], sizes = [2, 8, 16], strides = [1, 1, 1]} : vector<2x8x48xf32> to vector<2x8x16xf32>
    %10 = arith.truncf %5 : vector<2x8x16xf32> to vector<2x8x16xbf16>
    %11 = arith.truncf %8 : vector<2x8x16xf32> to vector<2x8x16xbf16>
    "tpu.trace_start"() <{level = 10 : i32, message = "bth,bsh->bts"}> : () -> ()
    %cst_5 = arith.constant dense<0.000000e+00> : vector<2x8x8xf32>
    %12 = tpu.matmul %10, %11, %cst_5 {dimension_numbers = #tpu.dot_dimension_numbers<[2], [2], [1], [1], [0, 0, 0, 1, 1, 1], [0], [0]>} : vector<2x8x16xbf16>, vector<2x8x16xbf16>, vector<2x8x8xf32> -> vector<2x8x8xf32>
    "tpu.trace_stop"() : () -> ()
    %13 = tpu.iota {dimensions = array<i32: 1>} : vector<2x8x8xi32>
    %14 = tpu.iota {dimensions = array<i32: 2>} : vector<2x8x8xi32>
    %15 = arith.cmpi sle, %14, %13 : vector<2x8x8xi32>
    %cst_6 = arith.constant 0xFF800000 : f32
    %16 = vector.broadcast %cst_6 : f32 to vector<2x8x8xf32>
    %17 = arith.select %15, %12, %16 : vector<2x8x8xi1>, vector<2x8x8xf32>
    %cst_7 = arith.constant dense<0xFF800000> : vector<2x8xf32>
    %18 = vector.multi_reduction <maximumf>, %17, %cst_7 [2] : vector<2x8x8xf32> to vector<2x8xf32>
    %19 = vector.shape_cast %18 : vector<2x8xf32> to vector<2x8x1xf32>
    %20 = vector.broadcast %19 : vector<2x8x1xf32> to vector<2x8x8xf32>
    %21 = arith.subf %17, %20 : vector<2x8x8xf32>
    %22 = math.exp %21 : vector<2x8x8xf32>
    %cst_8 = arith.constant dense<0.000000e+00> : vector<2x8xf32>
    %23 = vector.multi_reduction <add>, %22, %cst_8 [2] : vector<2x8x8xf32> to vector<2x8xf32>
    %24 = vector.shape_cast %23 : vector<2x8xf32> to vector<2x8x1xf32>
    %25 = vector.broadcast %24 : vector<2x8x1xf32> to vector<2x8x8xf32>
    %26 = arith.divf %22, %25 : vector<2x8x8xf32>
    %27 = arith.truncf %26 : vector<2x8x8xf32> to vector<2x8x8xbf16>
    %28 = arith.truncf %9 : vector<2x8x16xf32> to vector<2x8x16xbf16>
    "tpu.trace_start"() <{level = 10 : i32, message = "bts,bsh->bth"}> : () -> ()
    %cst_9 = arith.constant dense<0.000000e+00> : vector<2x8x16xf32>
    %29 = tpu.matmul %27, %28, %cst_9 {dimension_numbers = #tpu.dot_dimension_numbers<[2], [1], [1], [2], [0, 0, 0, 1, 1, 2], [0], [0]>} : vector<2x8x8xbf16>, vector<2x8x16xbf16>, vector<2x8x16xf32> -> vector<2x8x16xf32>
    "tpu.trace_stop"() : () -> ()
    %c0_10 = arith.constant 0 : index
    %c0_11 = arith.constant 0 : index
    %c0_12 = arith.constant 0 : index
    %30 = vector.load %arg3[%c0_10, %c0_11, %c0_12] : memref<2x8x16xf32, #tpu.memory_space<vmem>>, vector<2x8x16xf32>
    tpu.vector_store %arg3[%c0_10, %c0_11, %c0_12], %29 {strides = array<i32>} : memref<2x8x16xf32, #tpu.memory_space<vmem>>, vector<2x8x16xf32>,
    return
  }
  func.func @transform_0(%arg0: i32) -> (i32, i32, i32) {
    %c0_i32 = arith.constant 0 : i32
    %c0_i32_0 = arith.constant 0 : i32
    %c0_i32_1 = arith.constant 0 : i32
    return %arg0, %c0_i32, %c0_i32_0 : i32, i32, i32
  }
  func.func @transform_1(%arg0: i32) -> (i32, i32) {
    %c0_i32 = arith.constant 0 : i32
    %c0_i32_0 = arith.constant 0 : i32
    %c0_i32_1 = arith.constant 0 : i32
    return %c0_i32, %c0_i32_0 : i32, i32
  }
  func.func @transform_2(%arg0: i32) -> (i32, i32, i32) {
    %c0_i32 = arith.constant 0 : i32
    %c0_i32_0 = arith.constant 0 : i32
    %c0_i32_1 = arith.constant 0 : i32
    return %arg0, %c0_i32, %c0_i32_0 : i32, i32, i32
  }
}

</mosaic_0001>

<bundles_post_ra>
// kernel: tpu_custom_call.1
= control target key start
LH: loop header
LB: loop body
LE: loop exit
PB: predicated region body
PF: predicated region fallthrough
CT: control target
= control target key end

     0   :  { %7 = vsyncpa [#allocation3], 0  ;;  %s591_s0 = inlined_call_operand.hbm [shape: bf16[2,8,32], index: 0, kind: input, shape index: {}]   ;;  %s592_s1 = inlined_call_operand.hbm [shape: bf16[32,48], index: 1, kind: input, shape index: {}]   ;;  %s593_s2 = inlined_call_operand.hbm [shape: f32[2,8,16], index: 2, kind: output, shape index: {}]  }
   0x1   :  { %8 = vsyncpa [#allocation6], 0 }
   0x2   :  { %9 = vsyncpa [#allocation4], 0  ;;  %s510_s9 = smov [#allocation2]   ;;  %s438_s13 = scalar_lea.hbm %s591_s0, 128 }
   0x3   :  { %s15_s10 = sshll.u32 %s510_s9, 4  ;;  %p439_p0 = scmp.ne.s32.totalorder %s591_s0, %s438_s13  ;;  %s16_s10 = int_to_ptr.vmem [resolvable:$true] %s15_s10 }
   0x4   :  { %p442_p1 = scmp.lt.u32.totalorder %s438_s13, %s591_s0 }
   0x6   :  { %p444_p2 = pnand %p442_p1, %p439_p0 }
   0x8   :  { %447 = shalt.err (!%p444_p2)
}
   0x9   :  { %s448_s18 = scalar_lea.vmem %s16_s10, 128  ;;  %p453_p4 = scmp.lt.s32.totalorder %s16_s10, %s16_s10 }
   0xa   :  { %p449_p3 = scmp.ne.s32.totalorder %s16_s10, %s448_s18  ;;  %p454_p5 = scmp.lt.s32.totalorder %s448_s18, %s448_s18 }
   0xc   :  { %p455_p6 = por %p454_p5, %p453_p4 }
   0xe   :  { %p456_p7 = pnand %p455_p6, %p449_p3 }
  0x10   :  { %459 = shalt.err (!%p456_p7)
}
  0x11   :  { %s511_s19 = smov 64   ;;  %s512_s20 = smov 4  }
  0x12   :  { %21 = dma.hbm_to_vmem [thread:$0]  %s591_s0, 128, %s16_s10, [#allocation3], %s511_s19, %s511_s19, %s512_s20  }
  0x13   :  { %s513_s23 = smov [#allocation5]   ;;  %s460_s27 = scalar_lea.hbm %s592_s1, 256 }
  0x14   :  { %s27_s24 = sshll.u32 %s513_s23, 4  ;;  %p461_p8 = scmp.ne.s32.totalorder %s592_s1, %s460_s27  ;;  %s28_s24 = int_to_ptr.vmem [resolvable:$true] %s27_s24 }
  0x15   :  { %p464_p9 = scmp.lt.u32.totalorder %s460_s27, %s592_s1 }
  0x17   :  { %p466_p10 = pnand %p464_p9, %p461_p8 }
  0x19   :  { %469 = shalt.err (!%p466_p10)
}
  0x1a   :  { %s470_s4 = scalar_lea.vmem %s28_s24, 256  ;;  %p475_p12 = scmp.lt.s32.totalorder %s28_s24, %s28_s24 }
  0x1b   :  { %p471_p11 = scmp.ne.s32.totalorder %s28_s24, %s470_s4  ;;  %p476_p13 = scmp.lt.s32.totalorder %s470_s4, %s470_s4 }
  0x1d   :  { %p477_p0 = por %p476_p13, %p475_p12 }
  0x1f   :  { %p478_p1 = pnand %p477_p0, %p471_p11 }
  0x21   :  { %481 = shalt.err (!%p478_p1)
}
  0x22   :  { %33 = dma.hbm_to_vmem [thread:$0]  %s592_s1, 256, %s28_s24, [#allocation6], %s511_s19, %s511_s19, %s512_s20  }
  0x23   :  { %504 = dma.done.wait [#allocation3], 128  }
  0x24   :  { %505 = vsyncadd [#allocation3], 4294967168 }
  0x25   :  { %506 = dma.done.wait [#allocation6], 256  }
  0x26   :  { %507 = vsyncadd [#allocation6], 4294967040  ;;  %v514_v0 = vmov 0.0   ;;  %vm515_vm0 = vmmov 0   ;;  %v427_v1 = vld [vmem:[#allocation5] sm:$0xff]   ;;  %v428_v2 = vld [vmem:[#allocation5 + $0x8] sm:$0xff]   ;;  %v214_v18 = vlaneseq }
  0x27   :  { %384 = vmatprep.subr.bf16.mxu0 %v514_v0  ;;  %388 = vmatprep.mubr.msk.bf16.mxu0 %vm515_vm0, %v514_v0  ;;  %v429_v3 = vld [vmem:[#allocation2] sm:$0xff]   ;;  %vm64_vm1 = vcmask 261120   ;;  %s516_s1 = smov 112   ;;  %vm118_vm2 = vcmask 130048   ;;  %vm221_vm4 = vcmask 64512   ;;  %s517_s6 = smov 96  }
  0x28   :  { %392 = vmatprep.subr.bf16.mxu1 %v514_v0  ;;  %394 = vmatprep.mubr.msk.bf16.mxu1 %vm515_vm0, %v514_v0  ;;  %v215_v19 = vshrl.u32 %v214_v18, 7  ;;  %v217_v20 = vand.u32 127, %v214_v18  ;;  %vm252_vm5 = vcmask 1043456   ;;  %s518_s7 = smov [#allocation7]  }
  0x29   :  { %385 = vmatpush3.bf16.msra.mxu0 %v427_v1  ;;  %s352_s8 = sshll.u32 %s518_s7, 4  ;;  %s353_s8 = int_to_ptr.vmem [resolvable:$true] %s352_s8 }
  0x2a   :  { %386 = vmatprep.subr.bf16.mxu0 %v514_v0  ;;  %vm218_vm3 = vcmp.le.s32.totalorder %v217_v20, %v215_v19  ;;  %s482_s9 = scalar_lea.vmem %s353_s8, 256  ;;  %p487_p3 = scmp.lt.s32.totalorder %s353_s8, %s353_s8 }
  0x2b   :  { %p483_p2 = scmp.ne.s32.totalorder %s353_s8, %s482_s9  ;;  %p488_p4 = scmp.lt.s32.totalorder %s482_s9, %s482_s9 }
  0x2d   :  { %387 = vmatpush3.bf16.msra.mxu0 %v428_v2  ;;  %p489_p5 = por %p488_p4, %p487_p3 }
  0x2e   :  { %398 = vmatprep.subr.bf16.mxu0 %v514_v0 }
  0x2f   :  { %p490_p6 = pnand %p489_p5, %p483_p2 }
  0x30   :  { %389 = vmatmul.mubr.msk.bf16.vlgmr.msra.gmra.mrb[0].mxu0 %vm64_vm1, %v429_v3 }
  0x31   :  { %400 = vmatprep.mubr.msk.bf16.mxu0 %vm515_vm0, %v514_v0 }
 0x103   :  { %v102_v4 = vpop.f32.mrb[0].mxu0 }
 0x104   :  { %v109_v5 = vmul.f32 0.17677669, %v102_v4  ;;  %v390_v6 = vpop.f32.mrb[1].mxu0  ;;  %v111_v16 = vpack.c.bf16 %v102_v4, %v102_v4 }
 0x105   :  { %v105_v7 = vpop.f32.mrb[2].mxu0 }
 0x106   :  { %v110_v8 = vmul.f32 0.17677669, %v105_v7  ;;  %v391_v9 = vpop.f32.mrb[3].mxu0  ;;  %v113_v10 = vpack.c.bf16 %v109_v5, %v109_v5  ;;  %v112_v17 = vpack.c.bf16 %v105_v7, %v105_v7 }
 0x108   :  { %116 = vrot.lane.b32.xlu0 %v113_v10, %s516_s1  ;;  %v114_v11 = vpack.c.bf16 %v110_v8, %v110_v8 }
 0x10c   :  { %166 = vrot.lane.b32.xlu0 %v114_v11, %s516_s1 }
 0x17a   :  { %v117_v12 = vpop.permute.xlu0 %116 }
 0x17b   :  { %v123_v13 = vsel %vm118_vm2, %v117_v12, 0 }
 0x17c   :  { %393 = vmatpush3.bf16.xpose.msra.mxu1 %v123_v13 }
 0x17d   :  { %404 = vmatprep.subr.bf16.mxu1 %v514_v0 }
 0x17e   :  { %v167_v14 = vpop.permute.xlu0 %166 }
 0x17f   :  { %v172_v15 = vsel %vm118_vm2, %v167_v14, 0 }
 0x180   :  { %399 = vmatpush3.bf16.xpose.msra.mxu0 %v172_v15 }
 0x181   :  { %410 = vmatprep.subr.bf16.mxu0 %v514_v0 }
 0x183   :  { %395 = vmatmul.mubr.msk.bf16.vlgmr.msra.gmra.mrb[0].mxu1 %vm118_vm2, %v111_v16 }
 0x184   :  { %406 = vmatprep.mubr.msk.bf16.mxu1 %vm515_vm0, %v514_v0 }
 0x187   :  { %401 = vmatmul.mubr.msk.bf16.vlgmr.msra.gmra.mrb[4].mxu0 %vm118_vm2, %v112_v17 }
 0x188   :  { %412 = vmatprep.mubr.msk.bf16.mxu0 %vm515_vm0, %v514_v0 }
 0x256   :  { %v159_v21 = vpop.f32.mrb[0].mxu1 }
 0x257   :  { %v219_v22 = vsel %vm218_vm3, %v159_v21, -inf  ;;  %v396_v23 = vpop.f32.mrb[1].mxu1 }
 0x258   :  { %v162_v24 = vpop.f32.mrb[2].mxu1  ;;  %v222_v25 = vsel %vm221_vm4, %v219_v22, -inf }
 0x259   :  { %223 = vmax.xlane.f32.xlu1 %v222_v25  ;;  %v397_v26 = vpop.f32.mrb[3].mxu1 }
 0x25a   :  { %v208_v27 = vpop.f32.mrb[4].mxu0 }
 0x25b   :  { %v220_v28 = vsel %vm218_vm3, %v208_v27, -inf  ;;  %v402_v29 = vpop.f32.mrb[5].mxu0 }
 0x25c   :  { %v211_v30 = vpop.f32.mrb[6].mxu0  ;;  %v225_v31 = vsel %vm221_vm4, %v220_v28, -inf }
 0x25d   :  { %226 = vmax.xlane.f32.xlu1 %v225_v31  ;;  %v403_v32 = vpop.f32.mrb[7].mxu0 }
 0x26e   :  { %247 = vrot.lane.b32.xlu1 %v111_v16, %s517_s6 }
 0x2e6   :  { %v224_v33 = vpop.xlane.xlu1 %223 }
 0x2e7   :  { %v228_v34 = vsub.f32 %v219_v22, %v224_v33 }
 0x2e9   :  { %v230_v35 = vmul.f32 1.442695, %v228_v34 }
 0x2ea   :  { %v227_v36 = vpop.xlane.xlu1 %226 }
 0x2eb   :  { %430 = vpow2.f32 %v230_v35  ;;  %v229_v37 = vsub.f32 %v220_v28, %v227_v36 }
 0x2ed   :  { %v232_v38 = vmul.f32 1.442695, %v229_v37 }
 0x2ee   :  { %v248_v39 = vpop.permute.xlu1 %247 }
 0x2ef   :  { %432 = vpow2.f32 %v232_v38  ;;  %v254_v40 = vsel %vm252_vm5, %v248_v39, 0 }
 0x2f0   :  { %405 = vmatpush3.bf16.msra.mxu1 %v254_v40 }
 0x2f5   :  { %v431_v41 = vpop.eup %430 }
 0x2f6   :  { %v234_v42 = vsel %vm221_vm4, %v431_v41, 0.0 }
 0x2f7   :  { %235 = vadd.xlane.f32.xlu0 %v234_v42 }
 0x2f9   :  { %v433_v43 = vpop.eup %432 }
 0x2fa   :  { %v237_v44 = vsel %vm221_vm4, %v433_v43, 0.0 }
 0x2fb   :  { %238 = vadd.xlane.f32.xlu1 %v237_v44 }
 0x30c   :  { %297 = vrot.lane.b32.xlu1 %v112_v17, %s517_s6 }
 0x384   :  { %v236_v45 = vpop.xlane.xlu0 %235 }
 0x385   :  { %434 = vrcp.f32 %v236_v45 }
 0x388   :  { %v239_v46 = vpop.xlane.xlu1 %238 }
 0x389   :  { %436 = vrcp.f32 %v239_v46 }
 0x38c   :  { %v298_v47 = vpop.permute.xlu1 %297 }
 0x38d   :  { %v303_v48 = vsel %vm252_vm5, %v298_v47, 0 }
 0x38e   :  { %411 = vmatpush3.bf16.msra.mxu0 %v303_v48 }
 0x38f   :  { %v435_v49 = vpop.eup %434 }
 0x390   :  { %v241_v50 = vmul.f32 %v435_v49, %v431_v41 }
 0x392   :  { %v244_v51 = vpack.c.bf16 %v241_v50, %v241_v50 }
 0x393   :  { %v437_v52 = vpop.eup %436 }
 0x394   :  { %v243_v53 = vmul.f32 %v437_v52, %v433_v43  ;;  %407 = vmatmul.mubr.msk.bf16.vlgmr.msra.gmra.mrb[4].mxu1 %vm221_vm4, %v244_v51 }
 0x396   :  { %v245_v54 = vpack.c.bf16 %v243_v53, %v243_v53 }
 0x398   :  { %413 = vmatmul.mubr.msk.bf16.vlgmr.msra.gmra.mrb[8].mxu0 %vm221_vm4, %v245_v54 }
 0x467   :  { %v290_v55 = vpop.f32.mrb[4].mxu1 }
 0x468   :  { %345 = vst.msk [vmem:[#allocation7] sm:$0xff] %vm118_vm2, %v290_v55  ;;  %v408_v56 = vpop.f32.mrb[5].mxu1 }
 0x469   :  { %v293_v57 = vpop.f32.mrb[6].mxu1 }
 0x46a   :  { %v409_v58 = vpop.f32.mrb[7].mxu1 }
 0x46b   :  { %v339_v59 = vpop.f32.mrb[8].mxu0 }
 0x46c   :  { %346 = vst.msk [vmem:[#allocation7 + $0x8] sm:$0xff] %vm118_vm2, %v339_v59  ;;  %v414_v60 = vpop.f32.mrb[9].mxu0 }
 0x46d   :  { %v342_v61 = vpop.f32.mrb[10].mxu0 }
 0x46e   :  { %493 = shalt.err (!%p490_p6)
}
 0x46f   :  { %s494_s12 = scalar_lea.hbm %s593_s2, 256 }
 0x470   :  { %p495_p7 = scmp.ne.s32.totalorder %s593_s2, %s494_s12  ;;  %p498_p8 = scmp.lt.u32.totalorder %s494_s12, %s593_s2 }
 0x472   :  { %p500_p9 = pnand %p498_p8, %p495_p7 }
 0x474   :  { %503 = shalt.err (!%p500_p9)
}
 0x475   :  { %s519_s17 = smov 128   ;;  %s520_s18 = smov 8   ;;  %v415_v62 = vpop.f32.mrb[11].mxu0 }
 0x476   :  { %358 = dma.vmem_to_hbm [thread:$0]  %s353_s8, 256, %s593_s2, [#allocation4], %s519_s17, %s519_s17, %s520_s18  }
 0x477   :  { %508 = dma.done.wait [#allocation4], 256  }
 0x478   :  { %509 = vsyncadd [#allocation4], 4294967040 }
 0x479   :  { %362 = vsyncpa [#allocation3], 1 }
 0x47a   :  { %363 = vsyncpa [#allocation6], 1 }
 0x47b   :  { %364 = vsyncpa [#allocation4], 1 }

</bundles_post_ra>
